<compile_context>
chip_gen: v6e
topology: v6e:2x2x1
jax: 0.10.0
libtpu: 0.0.40
codegen_flags: <defaults>
</compile_context>

<pallas_src>
import functools

import jax
import jax.numpy as jnp
from jax.experimental import pallas as pl
from jax.experimental.pallas import tpu as pltpu

# ---------------- configuration (small, consistent with the module) ----------------
IN_CHANNELS   = 3
TRANS_DIM     = 64
DEPTH         = 2
NUM_HEADS     = 4
HEAD_DIM      = TRANS_DIM // NUM_HEADS
GROUP_K       = 8      # group_size (kNN neighbours per patch)
PATCH_NUM     = 8      # number of patches (FPS centers)
ENCODER_DIMS  = 64
DET_TOKEN_NUM = 4      # det_token_init_type == 'random'
MLP_RATIO     = 4.0
BN_EPS        = 1e-5
LN_EPS        = 1e-5
NUM_TOKENS    = 1 + PATCH_NUM + DET_TOKEN_NUM


# =====================================================================================
# small in-kernel helpers (pure jnp, traced inside Pallas kernels)
# =====================================================================================
def _dot(a, b):
    return jnp.dot(a, b, preferred_element_type=jnp.float32)


def _dot_nt(a, b):
    """a @ b.T without materializing a transpose (contract last dims)."""
    return jax.lax.dot_general(a, b, (((1,), (1,)), ((), ())),
                               preferred_element_type=jnp.float32)


def _ln_vals(x, g, b, eps=LN_EPS):
    mu = jnp.mean(x, axis=-1, keepdims=True)
    var = jnp.mean(jnp.square(x - mu), axis=-1, keepdims=True)
    return (x - mu) * jax.lax.rsqrt(var + eps) * g + b


def _knn_select(xt, c, group_size, npoints):
    """k-nearest selection. xt: (3, N), c: (G, 3).
    Returns list of `group_size` one-hot (G, N) selection masks, nearest first.
    Squared-distance surrogate ||x||^2 - 2 c.x (per-row ||c||^2 dropped: same ranking).
    c.x is 3 VPU broadcast FMAs (no 3-deep MXU matmul)."""
    cx = (c[:, 0:1] * xt[0][None, :] + c[:, 1:2] * xt[1][None, :]
          + c[:, 2:3] * xt[2][None, :])                           # (G, N)
    xx = xt[0] * xt[0] + xt[1] * xt[1] + xt[2] * xt[2]            # (N,)
    d = xx[None, :] - 2.0 * cx                                    # (G, N)
    iota = jax.lax.broadcasted_iota(jnp.int32, d.shape, 1).astype(jnp.float32)
    ohs = []
    for _ in range(group_size):
        m = jnp.min(d, axis=-1, keepdims=True)                    # (G, 1)
        sel = jnp.min(jnp.where(d <= m, iota, float(npoints)),
                      axis=-1, keepdims=True)                     # lowest index among ties
        hit = iota == sel                                         # (G, N) one-hot
        ohs.append(hit.astype(jnp.float32))
        d = jnp.where(hit, jnp.float32(1e30), d)                  # exclude selected point
    return ohs


# =====================================================================================
# Kernel 1: the `Group` module (kNN grouping; FPS centers are computed outside)
#   inputs : xyz^T (B, 3, N), center (B, G, 3)
#   output : (B, G, K, 3) relative neighbourhoods, emitted directly in final layout
# =====================================================================================
def _group_kernel(xt_ref, c_ref, o_ref, *, group_size, npoints):
    xt = xt_ref[0]                                                # (3, N)
    c = c_ref[0]                                                  # (G, 3)
    G = c.shape[0]
    ohs = _knn_select(xt, c, group_size, npoints)
    oh = jnp.stack(ohs, axis=1).reshape(G * group_size, npoints)  # (G*K, N), G-major
    gathered = _dot_nt(oh, xt).reshape(G, group_size, 3)          # ONE gather matmul (f32, exact)
    o_ref[0] = gathered - c[:, None, :]                           # ONE store, (G, K, 3) layout


def knn_group(xyz, center, group_size):
    B, N, _ = xyz.shape
    G = center.shape[1]
    xyz_t = jnp.transpose(xyz, (0, 2, 1))                         # (B, 3, N)
    return pl.pallas_call(
        functools.partial(_group_kernel, group_size=group_size, npoints=N),
        grid=(B,),
        in_specs=[pl.BlockSpec((1, 3, N), lambda b: (b, 0, 0)),
                  pl.BlockSpec((1, G, 3), lambda b: (b, 0, 0))],
        out_specs=pl.BlockSpec((1, G, group_size, 3), lambda b: (b, 0, 0, 0)),
        out_shape=jax.ShapeDtypeStruct((B, G, group_size, 3), jnp.float32),
        compiler_params=pltpu.CompilerParams(dimension_semantics=("parallel",)),
    )(xyz_t, center)


# =====================================================================================
# FPS (sequential / data-dependent) kept in plain JAX, centers gathered in JAX
# =====================================================================================
# TODO(synk): furthest-point sampling is inherently sequential (data-dependent argmax chain),
#             so it stays as a plain-JAX fori_loop rather than a Pallas kernel.
def furthest_point_sample(xyz, npoint):
    """xyz: (B, N, 3) -> (B, npoint) int32 indices (starts at index 0, like CUDA FPS)."""
    _, N, _ = xyz.shape

    def single(x):
        def body(i, carry):
            idxs, dist, last = carry
            idxs = idxs.at[i].set(last)
            d = jnp.sum(jnp.square(x - x[last]), axis=-1)
            dist = jnp.minimum(dist, d)
            nxt = jnp.argmax(dist).astype(jnp.int32)
            return idxs, dist, nxt

        idxs0 = jnp.zeros((npoint,), jnp.int32)
        dist0 = jnp.full((N,), 1e10, jnp.float32)
        idxs, _, _ = jax.lax.fori_loop(0, npoint, body, (idxs0, dist0, jnp.int32(0)))
        return idxs

    return jax.vmap(single)(xyz)


def group_divider(xyz, num_group, group_size):
    """The `Group` module: xyz (B, N, 3) -> neighborhood (B, G, M, 3), center (B, G, 3)."""
    idx = furthest_point_sample(xyz, num_group)                      # (B, G)
    center = jnp.take_along_axis(xyz, idx[..., None], axis=1)        # (B, G, 3)
    neighborhood = knn_group(xyz, center, group_size)                # Pallas kNN kernel
    return neighborhood, center


# =====================================================================================
# Kernel 2: fused kNN grouping + patch encoder (+ reduce Linear) + center pos-embed MLP
#   one pallas_call per batch element; output packed lane-dense as (B, G, 2C)
# =====================================================================================
def _encoder_kernel(xt_ref, c_ref, vec_ref, w2_ref, w3_ref, w4_ref, rw_ref, pw2_ref,
                    out_ref, *, npoints):
    C, K, G = TRANS_DIM, GROUP_K, PATCH_NUM
    bf = jnp.bfloat16
    xt = xt_ref[0]                                                   # (3, N) f32
    c = c_ref[0]                                                     # (G, 3) f32
    v = vec_ref[...]                                                 # (13, 512) f32 vector slab

    # --- kNN grouping fused in (K-major row order: row = k*G + g) ---
    ohs = _knn_select(xt, c, K, npoints)
    oh = jnp.concatenate(ohs, axis=0)                                # (K*G, N)
    gathered = _dot_nt(oh, xt)                                       # ONE gather matmul (f32, exact)
    rel = (gathered.reshape(K, G, 3) - c[None, :, :]).reshape(K * G, 3)

    # --- Conv1d 3->128 (BN folded) on the VPU: 3 broadcast FMAs + ReLU ---
    h = jnp.maximum(rel[:, 0:1] * v[0, :128] + rel[:, 1:2] * v[1, :128]
                    + rel[:, 2:3] * v[2, :128] + v[3, :128], 0.0)    # (K*G, 128)
    f = _dot(h.astype(bf), w2_ref[...]) + v[4, :256]                 # Conv1d 128->256   (K*G, 256)

    # per-group max over the K points of each group (K-major -> reduce leading axis)
    fg = jnp.max(f.reshape(K, G, 256), axis=0)                       # (G, 256)
    fgb = jnp.broadcast_to(fg[None], (K, G, 256)).reshape(K * G, 256)
    cat = jnp.concatenate([fgb, f], axis=-1).astype(bf)              # (K*G, 512)
    h2 = jnp.maximum(_dot(cat, w3_ref[...]) + v[5], 0.0)             # Conv1d 512->512 (BN folded)
    f2 = _dot(h2.astype(bf), w4_ref[...]) + v[6, :ENCODER_DIMS]      # Conv1d 512->enc

    tok = jnp.max(f2.reshape(K, G, ENCODER_DIMS), axis=0)            # (G, enc) per-group max
    tok = _dot(tok.astype(bf), rw_ref[...]) + v[7, :C]               # reduce_dim Linear -> (G, C)

    # positional embedding of patch centers: Linear(3,128) on VPU + GELU + Linear(128, C)
    ph = (c[:, 0:1] * v[8, :128] + c[:, 1:2] * v[9, :128]
          + c[:, 2:3] * v[10, :128] + v[11, :128])
    ph = jax.nn.gelu(ph, approximate=True)                           # tanh GELU (EUP)
    posc = _dot(ph.astype(bf), pw2_ref[...]) + v[12, :C]

    out_ref[0] = jnp.concatenate([tok, posc], axis=-1)               # lane-dense (G, 2C)


def encoder_and_pos(xyz_t, center, params):
    """xyz_t (B, 3, N), center (B, G, 3) -> packed (B, G, 2C): [:, :, :C]=tokens, [:, :, C:]=pos."""
    B, _, N = xyz_t.shape
    G, C = PATCH_NUM, TRANS_DIM
    bf = jnp.bfloat16
    ep = params["encoder"]

    # fold eval-mode BatchNorm (scale/shift) into the adjacent conv weights/biases.
    w1f = ep["w1"] * ep["s1"]
    b1f = (ep["b1"] * ep["s1"] + ep["t1"]).reshape(-1)
    w3f = ep["w3"] * ep["s2"]
    b3f = (ep["b3"] * ep["s2"] + ep["t2"]).reshape(-1)

    # pack all small vectors (and the two 3-row VPU weight matrices) into one f32 slab.
    W = 512
    rows = [w1f[0], w1f[1], w1f[2], b1f, ep["b2"].reshape(-1), b3f,
            ep["b4"].reshape(-1), params["reduce_b"].reshape(-1),
            params["pe_w1"][0], params["pe_w1"][1], params["pe_w1"][2],
            params["pe_b1"].reshape(-1), params["pe_b2"].reshape(-1)]
    vslab = jnp.stack([jnp.pad(r, (0, W - r.shape[0])) for r in rows], axis=0)   # (13, 512)

    wargs = [vslab, ep["w2"].astype(bf), w3f.astype(bf), ep["w4"].astype(bf),
             params["reduce_w"].astype(bf), params["pe_w2"].astype(bf)]

    in_specs = [pl.BlockSpec((1, 3, N), lambda b: (b, 0, 0)),
                pl.BlockSpec((1, G, 3), lambda b: (b, 0, 0))]
    for a in wargs:
        in_specs.append(pl.BlockSpec(a.shape, lambda b, _n=a.ndim: (0,) * _n))

    return pl.pallas_call(
        functools.partial(_encoder_kernel, npoints=N),
        grid=(B,),
        in_specs=in_specs,
        out_specs=pl.BlockSpec((1, G, 2 * C), lambda b: (b, 0, 0)),
        out_shape=jax.ShapeDtypeStruct((B, G, 2 * C), jnp.float32),
        compiler_params=pltpu.CompilerParams(dimension_semantics=("parallel",)),
    )(xyz_t, center, *wargs)


# =====================================================================================
# Kernel 3: fused transformer stack (token concat + DEPTH blocks + final norm on DET rows)
# =====================================================================================
def _transformer_kernel(gp_ref, tokpos_ref, vec_ref, fc1b_ref,
                        qkv_ref, proj_ref, fc1_ref, fc2_ref, o_ref):
    C, D = TRANS_DIM, HEAD_DIM
    bf = jnp.bfloat16
    gp = gp_ref[0]                                                   # (G, 2C)
    gtok, gpos = gp[:, :C], gp[:, C:]
    tk, ps = tokpos_ref[0], tokpos_ref[1]                            # (1+DET, C) each
    x = jnp.concatenate([tk[0:1], gtok, tk[1:]], axis=0)             # (Nt, C) cls | groups | det
    pos = jnp.concatenate([ps[0:1], gpos, ps[1:]], axis=0)
    vec = vec_ref[...]                                               # (6*DEPTH+2, C)
    scale = float(D) ** -0.5

    for bi in range(DEPTH):
        r = 6 * bi
        ln1_g, ln1_b, proj_b = vec[r], vec[r + 1], vec[r + 2]
        ln2_g, ln2_b, fc2_b = vec[r + 3], vec[r + 4], vec[r + 5]

        x = x + pos                                                  # pos added before every block
        h = _ln_vals(x, ln1_g, ln1_b).astype(bf)                     # LN1 (f32 math), bf16 for MXU

        # fused QKV: ONE (Nt,C)@(C,3C) matmul, then per-head lane slices
        qkv = _dot(h, qkv_ref[bi])                                   # (Nt, 3C) f32
        heads = []
        for hd in range(NUM_HEADS):
            q = qkv[:, hd * D:(hd + 1) * D]
            k = qkv[:, C + hd * D:C + (hd + 1) * D]
            v = qkv[:, 2 * C + hd * D:2 * C + (hd + 1) * D]
            s = _dot_nt(q.astype(bf), k.astype(bf)) * scale          # (Nt, Nt)
            s = s - jnp.max(s, axis=-1, keepdims=True)
            p = jnp.exp(s)
            p = p * pl.reciprocal(jnp.sum(p, axis=-1, keepdims=True), approx=True)
            heads.append(_dot(p.astype(bf), v.astype(bf)))           # (Nt, D)
        oc = jnp.concatenate(heads, axis=-1).astype(bf)              # (Nt, C)
        x = x + _dot(oc, proj_ref[bi]) + proj_b                      # ONE fused output projection

        h2 = _ln_vals(x, ln2_g, ln2_b).astype(bf)                    # LN2
        f = jax.nn.gelu(_dot(h2, fc1_ref[bi]) + fc1b_ref[bi], approximate=True)
        x = x + _dot(f.astype(bf), fc2_ref[bi]) + fc2_b              # residual

    det = x[x.shape[0] - DET_TOKEN_NUM:, :]                          # [DET] rows only
    o_ref[0] = _ln_vals(det, vec[6 * DEPTH], vec[6 * DEPTH + 1])     # final norm on DET rows only


def transformer_stack(gp, params):
    """gp: packed (B, G, 2C) group tokens+pos -> (B, DET_TOKEN_NUM, C)."""
    B = gp.shape[0]
    C = TRANS_DIM
    bf = jnp.bfloat16
    blocks = params["blocks"]

    qkv = jnp.stack([blk["qkv_w"] for blk in blocks]).astype(bf)      # (DEPTH, C, 3C)
    prj = jnp.stack([blk["proj_w"] for blk in blocks]).astype(bf)     # (DEPTH, C, C)
    fc1 = jnp.stack([blk["fc1_w"] for blk in blocks]).astype(bf)      # (DEPTH, C, 4C)
    fc2 = jnp.stack([blk["fc2_w"] for blk in blocks]).astype(bf)      # (DEPTH, 4C, C)
    fc1b = jnp.stack([blk["fc1_b"] for blk in blocks])                # (DEPTH, 4C) f32

    vec_rows = []
    for blk in blocks:
        vec_rows += [blk["ln1_g"], blk["ln1_b"], blk["proj_b"],
                     blk["ln2_g"], blk["ln2_b"], blk["fc2_b"]]
    vec_rows += [params["norm_g"], params["norm_b"]]
    vecs = jnp.stack(vec_rows, axis=0)                                # (6*DEPTH+2, C) f32

    tokpos = jnp.stack([
        jnp.concatenate([params["cls_token"].reshape(1, C),
                         params["det_token"].reshape(DET_TOKEN_NUM, C)], axis=0),
        jnp.concatenate([params["cls_pos"].reshape(1, C),
                         params["det_pos"].reshape(DET_TOKEN_NUM, C)], axis=0)], axis=0)  # (2,1+DET,C)

    wargs = [tokpos, vecs, fc1b, qkv, prj, fc1, fc2]
    in_specs = [pl.BlockSpec((1, PATCH_NUM, 2 * C), lambda b: (b, 0, 0))]
    for a in wargs:
        in_specs.append(pl.BlockSpec(a.shape, lambda b, _n=a.ndim: (0,) * _n))

    return pl.pallas_call(
        _transformer_kernel,
        grid=(B,),
        in_specs=in_specs,
        out_specs=pl.BlockSpec((1, DET_TOKEN_NUM, C), lambda b: (b, 0, 0)),
        out_shape=jax.ShapeDtypeStruct((B, DET_TOKEN_NUM, C), jnp.float32),
        compiler_params=pltpu.CompilerParams(dimension_semantics=("parallel",)),
    )(gp, *wargs)


# =====================================================================================
# Full PointTransformer forward (Group -> Encoder -> Transformer), 2 pallas_calls total
# =====================================================================================
def point_transformer_forward(params, pts):
    """pts: (B, N, 3) -> (B, det_token_num, trans_dim)."""
    xyz = pts[..., :3]
    idx = furthest_point_sample(xyz, PATCH_NUM)                       # FPS (plain JAX, sequential)
    center = jnp.take_along_axis(xyz, idx[..., None], axis=1)         # (B, G, 3)
    xyz_t = jnp.transpose(xyz, (0, 2, 1))                             # (B, 3, N)

    gp = encoder_and_pos(xyz_t, center, params)                       # kNN + encoder + pos fused
    return transformer_stack(gp, params)                              # (B, det, C)


# =====================================================================================
# Deterministic parameter init (synthetic, matches module __init__ shapes)
# =====================================================================================
def init_params(key):
    keys = iter(jax.random.split(key, 64))

    def w(shape, std=0.02):
        return (jax.random.normal(next(keys), shape, jnp.float32) * std).astype(jnp.float32)

    def zeros(shape):
        return jnp.zeros(shape, jnp.float32)

    def trunc(shape, std=0.02):
        return (jax.random.truncated_normal(next(keys), -2.0, 2.0, shape) * std).astype(jnp.float32)

    # BatchNorm (eval): scale = gamma / sqrt(var + eps), shift = beta - mean * scale.
    # With real checkpoints the actual running stats must be folded into s*/t* here.
    def bn_scale(c):
        return jnp.full((1, c), 1.0 / jnp.sqrt(1.0 + BN_EPS), jnp.float32)

    encoder = {
        "w1": w((3, 128)),   "b1": zeros((1, 128)),
        "s1": bn_scale(128), "t1": zeros((1, 128)),
        "w2": w((128, 256)), "b2": zeros((1, 256)),
        "w3": w((512, 512)), "b3": zeros((1, 512)),
        "s2": bn_scale(512), "t2": zeros((1, 512)),
        "w4": w((512, ENCODER_DIMS)), "b4": zeros((1, ENCODER_DIMS)),
    }

    hidden = int(TRANS_DIM * MLP_RATIO)
    blocks = []
    for _ in range(DEPTH):
        blocks.append({
            "ln1_g": jnp.ones((TRANS_DIM,), jnp.float32), "ln1_b": zeros((TRANS_DIM,)),
            "ln2_g": jnp.ones((TRANS_DIM,), jnp.float32), "ln2_b": zeros((TRANS_DIM,)),
            # qkv_bias=False -> bias identically zero, omitted from the kernel.
            "qkv_w": w((TRANS_DIM, 3 * TRANS_DIM)),
            "proj_w": w((TRANS_DIM, TRANS_DIM)),    "proj_b": zeros((TRANS_DIM,)),
            "fc1_w": w((TRANS_DIM, hidden)),        "fc1_b": zeros((hidden,)),
            "fc2_w": w((hidden, TRANS_DIM)),        "fc2_b": zeros((TRANS_DIM,)),
        })

    return {
        "encoder": encoder,
        "reduce_w": w((ENCODER_DIMS, TRANS_DIM)), "reduce_b": zeros((TRANS_DIM,)),
        "cls_token": zeros((1, 1, TRANS_DIM)),
        "cls_pos": jax.random.normal(next(keys), (1, 1, TRANS_DIM), jnp.float32),
        "det_token": trunc((1, DET_TOKEN_NUM, TRANS_DIM)),
        "det_pos":   trunc((1, DET_TOKEN_NUM, TRANS_DIM)),
        "pe_w1": w((3, 128)),          "pe_b1": zeros((128,)),
        "pe_w2": w((128, TRANS_DIM)),  "pe_b2": zeros((TRANS_DIM,)),
        "norm_g": jnp.ones((TRANS_DIM,), jnp.float32), "norm_b": zeros((TRANS_DIM,)),
        "blocks": blocks,
    }


if __name__ == "__main__":
    B, N = 2, 64
    key = jax.random.PRNGKey(0)
    pkey, xkey = jax.random.split(key)
    params = init_params(pkey)
    pts = jax.random.normal(xkey, (B, N, 3), jnp.float32)

    # `Group` module semantics: groups (B, G, M, 3), center (B, G, 3)
    groups, center = jax.jit(
        functools.partial(group_divider, num_group=PATCH_NUM, group_size=GROUP_K))(pts)
    jax.block_until_ready((groups, center))
    assert groups.shape == (B, PATCH_NUM, GROUP_K, 3), groups.shape
    assert center.shape == (B, PATCH_NUM, 3), center.shape

    fwd = jax.jit(functools.partial(point_transformer_forward, params))
    out = fwd(pts)
    jax.block_until_ready(out)

    assert out.shape == (B, DET_TOKEN_NUM, TRANS_DIM), out.shape
    assert out.dtype == jnp.float32
    print("KERNEL_OK")
</pallas_src>

<mosaic_0001>
module attributes {stable_mosaic.version = 11 : i64} {
  func.func @_group_kernel(%arg0: i32, %arg1: memref<1x3x64xf32, #tpu.memory_space<vmem>>, %arg2: memref<1x8x3xf32, #tpu.memory_space<vmem>>, %arg3: memref<1x8x8x3xf32, #tpu.memory_space<vmem>>) attributes {dimension_semantics = [#tpu.dimension_semantics<parallel>], iteration_bounds = array<i64: 2>, scalar_prefetch = 0 : i64, scratch_operands = 0 : i64, tpu.core_type = #tpu.core_type<tc>, window_params = [{transform_indices = @transform_0, window_bounds = array<i64: 1, 3, 64>}, {transform_indices = @transform_1, window_bounds = array<i64: 1, 8, 3>}, {transform_indices = @transform_2, window_bounds = array<i64: 1, 8, 8, 3>}]} {
    %c0 = arith.constant 0 : index
    %c0_0 = arith.constant 0 : index
    %c0_1 = arith.constant 0 : index
    %0 = vector.load %arg1[%c0, %c0_0, %c0_1] : memref<1x3x64xf32, #tpu.memory_space<vmem>>, vector<1x3x64xf32>
    %1 = vector.shape_cast %0 : vector<1x3x64xf32> to vector<3x64xf32>
    %c0_2 = arith.constant 0 : index
    %c0_3 = arith.constant 0 : index
    %c0_4 = arith.constant 0 : index
    %2 = vector.load %arg2[%c0_2, %c0_3, %c0_4] : memref<1x8x3xf32, #tpu.memory_space<vmem>>, vector<1x8x3xf32>
    %3 = vector.shape_cast %2 : vector<1x8x3xf32> to vector<8x3xf32>
    %4 = vector.extract_strided_slice %3 {offsets = [0, 0], sizes = [8, 1], strides = [1, 1]} : vector<8x3xf32> to vector<8x1xf32>
    %5 = vector.extract_strided_slice %1 {offsets = [0, 0], sizes = [1, 64], strides = [1, 1]} : vector<3x64xf32> to vector<1x64xf32>
    %6 = vector.shape_cast %5 : vector<1x64xf32> to vector<64xf32>
    %7 = vector.shape_cast %6 : vector<64xf32> to vector<1x64xf32>
    %8 = vector.broadcast %4 : vector<8x1xf32> to vector<8x64xf32>
    %9 = vector.broadcast %7 : vector<1x64xf32> to vector<8x64xf32>
    %10 = arith.mulf %8, %9 : vector<8x64xf32>
    %11 = vector.extract_strided_slice %3 {offsets = [0, 1], sizes = [8, 1], strides = [1, 1]} : vector<8x3xf32> to vector<8x1xf32>
    %12 = vector.extract_strided_slice %1 {offsets = [1, 0], sizes = [1, 64], strides = [1, 1]} : vector<3x64xf32> to vector<1x64xf32>
    %13 = vector.shape_cast %12 : vector<1x64xf32> to vector<64xf32>
    %14 = vector.shape_cast %13 : vector<64xf32> to vector<1x64xf32>
    %15 = vector.broadcast %11 : vector<8x1xf32> to vector<8x64xf32>
    %16 = vector.broadcast %14 : vector<1x64xf32> to vector<8x64xf32>
    %17 = arith.mulf %15, %16 : vector<8x64xf32>
    %18 = arith.addf %10, %17 : vector<8x64xf32>
    %19 = vector.extract_strided_slice %3 {offsets = [0, 2], sizes = [8, 1], strides = [1, 1]} : vector<8x3xf32> to vector<8x1xf32>
    %20 = vector.extract_strided_slice %1 {offsets = [2, 0], sizes = [1, 64], strides = [1, 1]} : vector<3x64xf32> to vector<1x64xf32>
    %21 = vector.shape_cast %20 : vector<1x64xf32> to vector<64xf32>
    %22 = vector.shape_cast %21 : vector<64xf32> to vector<1x64xf32>
    %23 = vector.broadcast %19 : vector<8x1xf32> to vector<8x64xf32>
    %24 = vector.broadcast %22 : vector<1x64xf32> to vector<8x64xf32>
    %25 = arith.mulf %23, %24 : vector<8x64xf32>
    %26 = arith.addf %18, %25 : vector<8x64xf32>
    %27 = vector.extract_strided_slice %1 {offsets = [0, 0], sizes = [1, 64], strides = [1, 1]} : vector<3x64xf32> to vector<1x64xf32>
    %28 = vector.shape_cast %27 : vector<1x64xf32> to vector<64xf32>
    %29 = vector.extract_strided_slice %1 {offsets = [0, 0], sizes = [1, 64], strides = [1, 1]} : vector<3x64xf32> to vector<1x64xf32>
    %30 = vector.shape_cast %29 : vector<1x64xf32> to vector<64xf32>
    %31 = arith.mulf %28, %30 : vector<64xf32>
    %32 = vector.extract_strided_slice %1 {offsets = [1, 0], sizes = [1, 64], strides = [1, 1]} : vector<3x64xf32> to vector<1x64xf32>
    %33 = vector.shape_cast %32 : vector<1x64xf32> to vector<64xf32>
    %34 = vector.extract_strided_slice %1 {offsets = [1, 0], sizes = [1, 64], strides = [1, 1]} : vector<3x64xf32> to vector<1x64xf32>
    %35 = vector.shape_cast %34 : vector<1x64xf32> to vector<64xf32>
    %36 = arith.mulf %33, %35 : vector<64xf32>
    %37 = arith.addf %31, %36 : vector<64xf32>
    %38 = vector.extract_strided_slice %1 {offsets = [2, 0], sizes = [1, 64], strides = [1, 1]} : vector<3x64xf32> to vector<1x64xf32>
    %39 = vector.shape_cast %38 : vector<1x64xf32> to vector<64xf32>
    %40 = vector.extract_strided_slice %1 {offsets = [2, 0], sizes = [1, 64], strides = [1, 1]} : vector<3x64xf32> to vector<1x64xf32>
    %41 = vector.shape_cast %40 : vector<1x64xf32> to vector<64xf32>
    %42 = arith.mulf %39, %41 : vector<64xf32>
    %43 = arith.addf %37, %42 : vector<64xf32>
    %44 = vector.shape_cast %43 : vector<64xf32> to vector<1x64xf32>
    %cst = arith.constant 2.000000e+00 : f32
    %45 = vector.broadcast %cst : f32 to vector<8x64xf32>
    %46 = arith.mulf %45, %26 : vector<8x64xf32>
    %47 = vector.broadcast %44 : vector<1x64xf32> to vector<8x64xf32>
    %48 = arith.subf %47, %46 : vector<8x64xf32>
    %49 = tpu.iota {dimensions = array<i32: 1>} : vector<8x64xi32>
    %50 = arith.sitofp %49 : vector<8x64xi32> to vector<8x64xf32>
    %cst_5 = arith.constant dense<0x7F800000> : vector<8xf32>
    %51 = vector.multi_reduction <minimumf>, %48, %cst_5 [1] : vector<8x64xf32> to vector<8xf32>
    %52 = vector.shape_cast %51 : vector<8xf32> to vector<8x1xf32>
    %53 = vector.broadcast %52 : vector<8x1xf32> to vector<8x64xf32>
    %54 = arith.cmpf ole, %48, %53 : vector<8x64xf32>
    %cst_6 = arith.constant 6.400000e+01 : f32
    %55 = vector.broadcast %cst_6 : f32 to vector<8x64xf32>
    %56 = arith.select %54, %50, %55 : vector<8x64xi1>, vector<8x64xf32>
    %cst_7 = arith.constant dense<0x7F800000> : vector<8xf32>
    %57 = vector.multi_reduction <minimumf>, %56, %cst_7 [1] : vector<8x64xf32> to vector<8xf32>
    %58 = vector.shape_cast %57 : vector<8xf32> to vector<8x1xf32>
    %59 = vector.broadcast %58 : vector<8x1xf32> to vector<8x64xf32>
    %60 = arith.cmpf oeq, %50, %59 : vector<8x64xf32>
    %61 = arith.extui %60 : vector<8x64xi1> to vector<8x64xi32>
    %62 = arith.sitofp %61 : vector<8x64xi32> to vector<8x64xf32>
    %cst_8 = arith.constant 1.000000e+30 : f32
    %63 = vector.broadcast %cst_8 : f32 to vector<8x64xf32>
    %64 = arith.select %60, %63, %48 : vector<8x64xi1>, vector<8x64xf32>
    %cst_9 = arith.constant dense<0x7F800000> : vector<8xf32>
    %65 = vector.multi_reduction <minimumf>, %64, %cst_9 [1] : vector<8x64xf32> to vector<8xf32>
    %66 = vector.shape_cast %65 : vector<8xf32> to vector<8x1xf32>
    %67 = vector.broadcast %66 : vector<8x1xf32> to vector<8x64xf32>
    %68 = arith.cmpf ole, %64, %67 : vector<8x64xf32>
    %cst_10 = arith.constant 6.400000e+01 : f32
    %69 = vector.broadcast %cst_10 : f32 to vector<8x64xf32>
    %70 = arith.select %68, %50, %69 : vector<8x64xi1>, vector<8x64xf32>
    %cst_11 = arith.constant dense<0x7F800000> : vector<8xf32>
    %71 = vector.multi_reduction <minimumf>, %70, %cst_11 [1] : vector<8x64xf32> to vector<8xf32>
    %72 = vector.shape_cast %71 : vector<8xf32> to vector<8x1xf32>
    %73 = vector.broadcast %72 : vector<8x1xf32> to vector<8x64xf32>
    %74 = arith.cmpf oeq, %50, %73 : vector<8x64xf32>
    %75 = arith.extui %74 : vector<8x64xi1> to vector<8x64xi32>
    %76 = arith.sitofp %75 : vector<8x64xi32> to vector<8x64xf32>
    %cst_12 = arith.constant 1.000000e+30 : f32
    %77 = vector.broadcast %cst_12 : f32 to vector<8x64xf32>
    %78 = arith.select %74, %77, %64 : vector<8x64xi1>, vector<8x64xf32>
    %cst_13 = arith.constant dense<0x7F800000> : vector<8xf32>
    %79 = vector.multi_reduction <minimumf>, %78, %cst_13 [1] : vector<8x64xf32> to vector<8xf32>
    %80 = vector.shape_cast %79 : vector<8xf32> to vector<8x1xf32>
    %81 = vector.broadcast %80 : vector<8x1xf32> to vector<8x64xf32>
    %82 = arith.cmpf ole, %78, %81 : vector<8x64xf32>
    %cst_14 = arith.constant 6.400000e+01 : f32
    %83 = vector.broadcast %cst_14 : f32 to vector<8x64xf32>
    %84 = arith.select %82, %50, %83 : vector<8x64xi1>, vector<8x64xf32>
    %cst_15 = arith.constant dense<0x7F800000> : vector<8xf32>
    %85 = vector.multi_reduction <minimumf>, %84, %cst_15 [1] : vector<8x64xf32> to vector<8xf32>
    %86 = vector.shape_cast %85 : vector<8xf32> to vector<8x1xf32>
    %87 = vector.broadcast %86 : vector<8x1xf32> to vector<8x64xf32>
    %88 = arith.cmpf oeq, %50, %87 : vector<8x64xf32>
    %89 = arith.extui %88 : vector<8x64xi1> to vector<8x64xi32>
    %90 = arith.sitofp %89 : vector<8x64xi32> to vector<8x64xf32>
    %cst_16 = arith.constant 1.000000e+30 : f32
    %91 = vector.broadcast %cst_16 : f32 to vector<8x64xf32>
    %92 = arith.select %88, %91, %78 : vector<8x64xi1>, vector<8x64xf32>
    %cst_17 = arith.constant dense<0x7F800000> : vector<8xf32>
    %93 = vector.multi_reduction <minimumf>, %92, %cst_17 [1] : vector<8x64xf32> to vector<8xf32>
    %94 = vector.shape_cast %93 : vector<8xf32> to vector<8x1xf32>
    %95 = vector.broadcast %94 : vector<8x1xf32> to vector<8x64xf32>
    %96 = arith.cmpf ole, %92, %95 : vector<8x64xf32>
    %cst_18 = arith.constant 6.400000e+01 : f32
    %97 = vector.broadcast %cst_18 : f32 to vector<8x64xf32>
    %98 = arith.select %96, %50, %97 : vector<8x64xi1>, vector<8x64xf32>
    %cst_19 = arith.constant dense<0x7F800000> : vector<8xf32>
    %99 = vector.multi_reduction <minimumf>, %98, %cst_19 [1] : vector<8x64xf32> to vector<8xf32>
    %100 = vector.shape_cast %99 : vector<8xf32> to vector<8x1xf32>
    %101 = vector.broadcast %100 : vector<8x1xf32> to vector<8x64xf32>
    %102 = arith.cmpf oeq, %50, %101 : vector<8x64xf32>
    %103 = arith.extui %102 : vector<8x64xi1> to vector<8x64xi32>
    %104 = arith.sitofp %103 : vector<8x64xi32> to vector<8x64xf32>
    %cst_20 = arith.constant 1.000000e+30 : f32
    %105 = vector.broadcast %cst_20 : f32 to vector<8x64xf32>
    %106 = arith.select %102, %105, %92 : vector<8x64xi1>, vector<8x64xf32>
    %cst_21 = arith.constant dense<0x7F800000> : vector<8xf32>
    %107 = vector.multi_reduction <minimumf>, %106, %cst_21 [1] : vector<8x64xf32> to vector<8xf32>
    %108 = vector.shape_cast %107 : vector<8xf32> to vector<8x1xf32>
    %109 = vector.broadcast %108 : vector<8x1xf32> to vector<8x64xf32>
    %110 = arith.cmpf ole, %106, %109 : vector<8x64xf32>
    %cst_22 = arith.constant 6.400000e+01 : f32
    %111 = vector.broadcast %cst_22 : f32 to vector<8x64xf32>
    %112 = arith.select %110, %50, %111 : vector<8x64xi1>, vector<8x64xf32>
    %cst_23 = arith.constant dense<0x7F800000> : vector<8xf32>
    %113 = vector.multi_reduction <minimumf>, %112, %cst_23 [1] : vector<8x64xf32> to vector<8xf32>
    %114 = vector.shape_cast %113 : vector<8xf32> to vector<8x1xf32>
    %115 = vector.broadcast %114 : vector<8x1xf32> to vector<8x64xf32>
    %116 = arith.cmpf oeq, %50, %115 : vector<8x64xf32>
    %117 = arith.extui %116 : vector<8x64xi1> to vector<8x64xi32>
    %118 = arith.sitofp %117 : vector<8x64xi32> to vector<8x64xf32>
    %cst_24 = arith.constant 1.000000e+30 : f32
    %119 = vector.broadcast %cst_24 : f32 to vector<8x64xf32>
    %120 = arith.select %116, %119, %106 : vector<8x64xi1>, vector<8x64xf32>
    %cst_25 = arith.constant dense<0x7F800000> : vector<8xf32>
    %121 = vector.multi_reduction <minimumf>, %120, %cst_25 [1] : vector<8x64xf32> to vector<8xf32>
    %122 = vector.shape_cast %121 : vector<8xf32> to vector<8x1xf32>
    %123 = vector.broadcast %122 : vector<8x1xf32> to vector<8x64xf32>
    %124 = arith.cmpf ole, %120, %123 : vector<8x64xf32>
    %cst_26 = arith.constant 6.400000e+01 : f32
    %125 = vector.broadcast %cst_26 : f32 to vector<8x64xf32>
    %126 = arith.select %124, %50, %125 : vector<8x64xi1>, vector<8x64xf32>
    %cst_27 = arith.constant dense<0x7F800000> : vector<8xf32>
    %127 = vector.multi_reduction <minimumf>, %126, %cst_27 [1] : vector<8x64xf32> to vector<8xf32>
    %128 = vector.shape_cast %127 : vector<8xf32> to vector<8x1xf32>
    %129 = vector.broadcast %128 : vector<8x1xf32> to vector<8x64xf32>
    %130 = arith.cmpf oeq, %50, %129 : vector<8x64xf32>
    %131 = arith.extui %130 : vector<8x64xi1> to vector<8x64xi32>
    %132 = arith.sitofp %131 : vector<8x64xi32> to vector<8x64xf32>
    %cst_28 = arith.constant 1.000000e+30 : f32
    %133 = vector.broadcast %cst_28 : f32 to vector<8x64xf32>
    %134 = arith.select %130, %133, %120 : vector<8x64xi1>, vector<8x64xf32>
    %cst_29 = arith.constant dense<0x7F800000> : vector<8xf32>
    %135 = vector.multi_reduction <minimumf>, %134, %cst_29 [1] : vector<8x64xf32> to vector<8xf32>
    %136 = vector.shape_cast %135 : vector<8xf32> to vector<8x1xf32>
    %137 = vector.broadcast %136 : vector<8x1xf32> to vector<8x64xf32>
    %138 = arith.cmpf ole, %134, %137 : vector<8x64xf32>
    %cst_30 = arith.constant 6.400000e+01 : f32
    %139 = vector.broadcast %cst_30 : f32 to vector<8x64xf32>
    %140 = arith.select %138, %50, %139 : vector<8x64xi1>, vector<8x64xf32>
    %cst_31 = arith.constant dense<0x7F800000> : vector<8xf32>
    %141 = vector.multi_reduction <minimumf>, %140, %cst_31 [1] : vector<8x64xf32> to vector<8xf32>
    %142 = vector.shape_cast %141 : vector<8xf32> to vector<8x1xf32>
    %143 = vector.broadcast %142 : vector<8x1xf32> to vector<8x64xf32>
    %144 = arith.cmpf oeq, %50, %143 : vector<8x64xf32>
    %145 = arith.extui %144 : vector<8x64xi1> to vector<8x64xi32>
    %146 = arith.sitofp %145 : vector<8x64xi32> to vector<8x64xf32>
    %cst_32 = arith.constant 1.000000e+30 : f32
    %147 = vector.broadcast %cst_32 : f32 to vector<8x64xf32>
    %148 = arith.select %144, %147, %134 : vector<8x64xi1>, vector<8x64xf32>
    %cst_33 = arith.constant dense<0x7F800000> : vector<8xf32>
    %149 = vector.multi_reduction <minimumf>, %148, %cst_33 [1] : vector<8x64xf32> to vector<8xf32>
    %150 = vector.shape_cast %149 : vector<8xf32> to vector<8x1xf32>
    %151 = vector.broadcast %150 : vector<8x1xf32> to vector<8x64xf32>
    %152 = arith.cmpf ole, %148, %151 : vector<8x64xf32>
    %cst_34 = arith.constant 6.400000e+01 : f32
    %153 = vector.broadcast %cst_34 : f32 to vector<8x64xf32>
    %154 = arith.select %152, %50, %153 : vector<8x64xi1>, vector<8x64xf32>
    %cst_35 = arith.constant dense<0x7F800000> : vector<8xf32>
    %155 = vector.multi_reduction <minimumf>, %154, %cst_35 [1] : vector<8x64xf32> to vector<8xf32>
    %156 = vector.shape_cast %155 : vector<8xf32> to vector<8x1xf32>
    %157 = vector.broadcast %156 : vector<8x1xf32> to vector<8x64xf32>
    %158 = arith.cmpf oeq, %50, %157 : vector<8x64xf32>
    %159 = arith.extui %158 : vector<8x64xi1> to vector<8x64xi32>
    %160 = arith.sitofp %159 : vector<8x64xi32> to vector<8x64xf32>
    %161 = vector.shape_cast %62 : vector<8x64xf32> to vector<8x1x64xf32>
    %162 = vector.shape_cast %76 : vector<8x64xf32> to vector<8x1x64xf32>
    %163 = vector.shape_cast %90 : vector<8x64xf32> to vector<8x1x64xf32>
    %164 = vector.shape_cast %104 : vector<8x64xf32> to vector<8x1x64xf32>
    %165 = vector.shape_cast %118 : vector<8x64xf32> to vector<8x1x64xf32>
    %166 = vector.shape_cast %132 : vector<8x64xf32> to vector<8x1x64xf32>
    %167 = vector.shape_cast %146 : vector<8x64xf32> to vector<8x1x64xf32>
    %168 = vector.shape_cast %160 : vector<8x64xf32> to vector<8x1x64xf32>
    %169 = tpu.concatenate %161, %162, %163, %164, %165, %166, %167, %168 in 1 : vector<8x1x64xf32>, vector<8x1x64xf32>, vector<8x1x64xf32>, vector<8x1x64xf32>, vector<8x1x64xf32>, vector<8x1x64xf32>, vector<8x1x64xf32>, vector<8x1x64xf32> -> vector<8x8x64xf32>
    %170 = vector.shape_cast %169 : vector<8x8x64xf32> to vector<64x64xf32>
    %cst_36 = arith.constant dense<0.000000e+00> : vector<64x3xf32>
    %171 = tpu.matmul %170, %1, %cst_36 {dimension_numbers = #tpu.dot_dimension_numbers<[1], [1], [0], [0], [0, 0, 1, 0], [], []>} : vector<64x64xf32>, vector<3x64xf32>, vector<64x3xf32> -> vector<64x3xf32>
    %172 = vector.shape_cast %171 : vector<64x3xf32> to vector<8x8x3xf32>
    %173 = vector.shape_cast %3 : vector<8x3xf32> to vector<8x1x3xf32>
    %174 = vector.broadcast %173 : vector<8x1x3xf32> to vector<8x8x3xf32>
    %175 = arith.subf %172, %174 : vector<8x8x3xf32>
    %c0_37 = arith.constant 0 : index
    %c0_38 = arith.constant 0 : index
    %c0_39 = arith.constant 0 : index
    %c0_40 = arith.constant 0 : index
    %176 = vector.load %arg3[%c0_37, %c0_38, %c0_39, %c0_40] : memref<1x8x8x3xf32, #tpu.memory_space<vmem>>, vector<1x8x8x3xf32>
    %177 = vector.shape_cast %176 : vector<1x8x8x3xf32> to vector<8x8x3xf32>
    %178 = vector.shape_cast %175 : vector<8x8x3xf32> to vector<1x8x8x3xf32>
    tpu.vector_store %arg3[%c0_37, %c0_38, %c0_39, %c0_40], %178 {strides = array<i32>} : memref<1x8x8x3xf32, #tpu.memory_space<vmem>>, vector<1x8x8x3xf32>,
    return
  }
  func.func @transform_0(%arg0: i32) -> (i32, i32, i32) {
    %c0_i32 = arith.constant 0 : i32
    %c0_i32_0 = arith.constant 0 : i32
    %c0_i32_1 = arith.constant 0 : i32
    return %arg0, %c0_i32, %c0_i32_0 : i32, i32, i32
  }
  func.func @transform_1(%arg0: i32) -> (i32, i32, i32) {
    %c0_i32 = arith.constant 0 : i32
    %c0_i32_0 = arith.constant 0 : i32
    %c0_i32_1 = arith.constant 0 : i32
    return %arg0, %c0_i32, %c0_i32_0 : i32, i32, i32
  }
  func.func @transform_2(%arg0: i32) -> (i32, i32, i32, i32) {
    %c0_i32 = arith.constant 0 : i32
    %c0_i32_0 = arith.constant 0 : i32
    %c0_i32_1 = arith.constant 0 : i32
    %c0_i32_2 = arith.constant 0 : i32
    return %arg0, %c0_i32, %c0_i32_0, %c0_i32_1 : i32, i32, i32, i32
  }
}

</mosaic_0001>

<bundles_post_ra>
// kernel: custom-call.4
= control target key start
LH: loop header
LB: loop body
LE: loop exit
PB: predicated region body
PF: predicated region fallthrough
CT: control target
= control target key end

     0   :  { %s6_s0 = inlined_call_operand.vmem [shape: f32[2,64], index: 0, kind: output, shape index: {}]  }

// kernel: group_divider.1
= control target key start
LH: loop header
LB: loop body
LE: loop exit
PB: predicated region body
PF: predicated region fallthrough
CT: control target
= control target key end

     0   :  { %s1458_s9 = smov 0   ;;  %s1743_s0 = inlined_call_operand.vmem [shape: f32[2,3,64], index: 0, kind: input, shape index: {}]   ;;  %s1744_s1 = inlined_call_operand.vmem [shape: f32[2,8,3], index: 1, kind: input, shape index: {}]   ;;  %s1745_s2 = inlined_call_operand.vmem [shape: f32[2,8,8,3], index: 2, kind: output, shape index: {}]  }
   0x1 LB: > { %s1359_s10 = sadd.s32 4294967295, %s1436_s9   ;;  %p1363_p0 = scmp.ge.s32.totalorder %s1436_s9, 1  ;;  %s1436_s9 = sphi %s1458_s9, %s12_s9  }
   0x2   : > { %p120_p1 = scmp.lt.s32.totalorder %s1436_s9, 3 }
   0x4   : > { %p121_p2 = pnand %p1363_p0, %p120_p1 }
   0x5   : > { %p145_p3 = scmp.lt.s32.totalorder (!%p121_p2), %s1359_s10, 1 }
   0x6   : > { %124 = sbr.rel (%p121_p2) target bundleno = 2623 (0xa3f), region = 28 }
   0xb   : > { %v1438_v0 = vmov 0   ;;  %v1439_v1 = vmov 2   ;;  %s1747_s10 = smov (!%p145_p3, %s1359_s10), 1  ;;  %v1440_v3 = vmov 1   ;;  %vm207_vm0 = vcmask 523264  }
   0xc   : > { %1426 = vset.pattern.permute.xlu0 %v1438_v0  ;;  %1428 = vset.pattern.permute.xlu1 %v1439_v1  ;;  %s1365_s11 = sshll.u32 %s1747_s10, 3  ;;  %s1364_s15 = sshll.u32 %s1747_s10, 2  ;;  %v165_v5 = vlaneseq  ;;  %v1441_v41 = vmov 1966171168   ;;  %v1442_v44 = vmov 0.0   ;;  %vm991_vm5 = vcmask 1040384  }
   0xd   : > { %s152_s14 = scalar_lea.vmem %s1744_s1, %s1365_s11  ;;  %s148_s18 = scalar_lea.vmem %s1743_s0, %s1364_s15  ;;  %v306_v42 = vunpack.c.l.s4 %v1441_v41  ;;  %vm1000_vm8 = vcmask 1041408   ;;  %vm1009_vm11 = vcmask 1042432   ;;  %vm1018_vm14 = vcmask 1043456  }
   0xe   : > { %v1472_v2 = vld [vmem:[%s152_s14] sm:$0xff]  ;;  %v166_v6 = vshrl.u32 %v165_v5, 7  ;;  %v205_v30 = vand.u32 127, %v165_v5  ;;  %s1387_s19 = sshll.u32 %s1747_s10, 6 }
   0xf   : > { %162 = vperm.xlu0 %1426, %v1472_v2   ;;  %181 = vperm.xlu1 %1428, %v1472_v2   ;;  %v158_v4 = vld [vmem:[%s148_s18] sm:$0x7]  ;;  %v307_v43 = vunpack.c.0.s8 %v306_v42  ;;  %s1717_s22 = scalar_lea.vmem %s1745_s2, %s1387_s19 }
  0x10   : > { %1397 = vmatprep.subr.msk.mxu0 %vm207_vm0, %v158_v4  ;;  %1411 = vmatprep.subr.msk.mxu1 %vm207_vm0, %v158_v4  ;;  %v190_v7 = vmul.f32 %v158_v4, %v158_v4  ;;  %v1485_v8 = vsub.s32 0, %v166_v6  ;;  %v176_v9 = vsub.s32 1, %v166_v6  ;;  %v186_v10 = vsub.s32 2, %v166_v6 }
  0x11   : > { %1398 = vmatpush3.xpose.msk.msra.mxu0 %vm207_vm0, %v158_v4  ;;  %1412 = vmatpush3.xpose.msk.msra.mxu1 %vm207_vm0, %v158_v4  ;;  %v1490_v31 = vcvt.s32.f32 %v205_v30  ;;  %v1499_v46 = vsub.s32 %v307_v43, %v166_v6 }
  0x12   : > { %v192_v11 = vrot.slane %v190_v7, 1  ;;  %v168_v13 = vrot.slane %v158_v4, %v1485_v8  ;;  %v177_v14 = vrot.slane %v158_v4, %v176_v9  ;;  %v187_v15 = vrot.slane %v158_v4, %v186_v10 }
  0x13   : > { %1427 = vset.pattern.permute.xlu0 %v1440_v3  ;;  %v195_v17 = vrot.slane %v190_v7, 2 }
  0x14   : > { %171 = vperm.xlu0 %1427, %v1472_v2   ;;  %v194_v16 = vadd.f32 %v192_v11, %v190_v7 }
  0x16   : > { %v197_v23 = vadd.f32 %v195_v17, %v194_v16 }
  0x18   : > { %1429 = vset.pattern.permute.xlu0 %v1439_v1  ;;  %v202_v26 = vrot.slane %v197_v23, %v1485_v8 }
  0x8a   : > { %v163_v12 = vpop.permute.xlu0 %162  ;;  %v182_v18 = vpop.permute.xlu1 %181 }
  0x8b   : > { %v169_v20 = vmul.f32 %v168_v13, %v163_v12  ;;  %v188_v22 = vmul.f32 %v187_v15, %v182_v18 }
  0x8f   : > { %v172_v19 = vpop.permute.xlu0 %171 }
  0x90   : > { %v178_v21 = vmul.f32 %v177_v14, %v172_v19 }
  0x92   : > { %v179_v24 = vadd.f32 %v178_v21, %v169_v20 }
  0x94   : > { %v189_v25 = vadd.f32 %v188_v22, %v179_v24 }
  0x96   : > { %v198_v27 = vmul.f32 2.0, %v189_v25 }
  0x98   : > { %v203_v28 = vsub.f32 %v202_v26, %v198_v27 }
  0x9a   : > { %v208_v29 = vsel %vm207_vm0, %v203_v28, inf }
  0x9b   : > { %209 = vmin.xlane.f32.xlu1 %v208_v29 }
 0x124   : > { %v210_v32 = vpop.xlane.xlu1 %209 }
 0x125   : > { %vm211_vm1 = vcmp.le.f32.partialorder %v203_v28, %v210_v32 }
 0x126   : > { %v212_v33 = vsel %vm211_vm1, %v1490_v31, 64.0 }
 0x127   : > { %v213_v34 = vsel %vm207_vm0, %v212_v33, inf }
 0x128   : > { %214 = vmin.xlane.f32.xlu0 %v213_v34 }
 0x1b1   : > { %v215_v35 = vpop.xlane.xlu0 %214 }
 0x1b2   : > { %vm216_vm2 = vcmp.eq.f32.partialorder %v1490_v31, %v215_v35 }
 0x1b3   : > { %v219_v36 = vsel %vm216_vm2, 1e+30, %v203_v28  ;;  %v1368_v45 = vsel %vm216_vm2, 1.0, %v1442_v44  ;;  %vm1027_vm2 = vcmask 1044480  }
 0x1b4   : > { %v220_v37 = vsel %vm207_vm0, %v219_v36, inf  ;;  %v304_v47 = vcombine.high %v1368_v45, %v1368_v45  ;;  %v311_v48 = vrot.slane %v1368_v45, %v1499_v46 }
 0x1b5   : > { %221 = vmin.xlane.f32.xlu1 %v220_v37 }
 0x1b6   : > { %v318_v49 = vrot.slane %v304_v47, %v1499_v46  ;;  %v319_v51 = vcombine.high %v311_v48, %v311_v48  ;;  %v327_v58 = vrot.slane %v311_v48, %v1499_v46 }
 0x1b8   : > { %v320_v57 = vcombine.high %v318_v49, %v318_v49  ;;  %v334_v59 = vrot.slane %v318_v49, %v1499_v46  ;;  %v341_v63 = vrot.slane %v319_v51, %v1499_v46  ;;  %v349_v6 = vcombine.high %v327_v58, %v327_v58 }
 0x1ba   : > { %v348_v5 = vrot.slane %v320_v57, %v1499_v46  ;;  %v350_v7 = vcombine.high %v334_v59, %v334_v59  ;;  %v351_v14 = vcombine.high %v341_v63, %v341_v63 }
 0x1bc   : > { %v352_v22 = vcombine.high %v348_v5, %v348_v5 }
 0x23e   : > { %v222_v38 = vpop.xlane.xlu1 %221 }
 0x23f   : > { %vm223_vm3 = vcmp.le.f32.partialorder %v219_v36, %v222_v38 }
 0x240   : > { %v224_v39 = vsel %vm223_vm3, %v1490_v31, 64.0 }
 0x241   : > { %v225_v40 = vsel %vm207_vm0, %v224_v39, inf }
 0x242   : > { %226 = vmin.xlane.f32.xlu0 %v225_v40 }
 0x2cb   : > { %v227_v50 = vpop.xlane.xlu0 %226 }
 0x2cc   : > { %vm228_vm4 = vcmp.eq.f32.partialorder %v1490_v31, %v227_v50 }
 0x2cd   : > { %v1369_v52 = vsel %vm228_vm4, 1.0, %v1442_v44  ;;  %v231_v53 = vsel %vm228_vm4, 1e+30, %v219_v36 }
 0x2ce   : > { %v362_v54 = vcombine.high %v1369_v52, %v1369_v52  ;;  %v369_v55 = vrot.slane %v1369_v52, %v1499_v46  ;;  %v232_v56 = vsel %vm207_vm0, %v231_v53, inf }
 0x2cf   : > { %233 = vmin.xlane.f32.xlu1 %v232_v56 }
 0x2d0   : > { %v376_v60 = vrot.slane %v362_v54, %v1499_v46  ;;  %v377_v61 = vcombine.high %v369_v55, %v369_v55  ;;  %v385_v62 = vrot.slane %v369_v55, %v1499_v46 }
 0x2d2   : > { %v378_v0 = vcombine.high %v376_v60, %v376_v60  ;;  %v392_v1 = vrot.slane %v376_v60, %v1499_v46  ;;  %v399_v3 = vrot.slane %v377_v61, %v1499_v46  ;;  %v407_v4 = vcombine.high %v385_v62, %v385_v62 }
 0x2d3   : > { %v714_v9 = vrot.slane %v385_v62, %v1485_v8 }
 0x2d4   : > { %v406_v10 = vrot.slane %v378_v0, %v1499_v46  ;;  %v408_v11 = vcombine.high %v392_v1, %v392_v1  ;;  %v409_v12 = vcombine.high %v399_v3, %v399_v3  ;;  %v718_v13 = vrot.slane %v399_v3, %v1485_v8 }
 0x2d5   : > { %v722_v15 = vrot.slane %v407_v4, %v1485_v8  ;;  %v730_v16 = vrot.slane %v392_v1, %v1485_v8  ;;  %v992_v17 = vsel %vm991_vm5, %v327_v58, %v714_v9 }
 0x2d6   : > { %v410_v18 = vcombine.high %v406_v10, %v406_v10  ;;  %v726_v19 = vrot.slane %v409_v12, %v1485_v8  ;;  %v734_v20 = vrot.slane %v406_v10, %v1485_v8  ;;  %v738_v21 = vrot.slane %v408_v11, %v1485_v8 }
 0x2d7   : > { %v993_v23 = vsel %vm991_vm5, %v341_v63, %v718_v13  ;;  %v994_v24 = vsel %vm991_vm5, %v349_v6, %v722_v15  ;;  %v996_v25 = vsel %vm991_vm5, %v334_v59, %v730_v16 }
 0x2d8   : > { %v742_v26 = vrot.slane %v410_v18, %v1485_v8  ;;  %v995_v27 = vsel %vm991_vm5, %v351_v14, %v726_v19  ;;  %v997_v28 = vsel %vm991_vm5, %v348_v5, %v734_v20  ;;  %v998_v29 = vsel %vm991_vm5, %v350_v7, %v738_v21 }
 0x2da   : > { %v999_v30 = vsel %vm991_vm5, %v352_v22, %v742_v26  ;;  %vm1036_vm5 = vcmask 1045504  }
 0x358   : > { %v234_v32 = vpop.xlane.xlu1 %233 }
 0x359   : > { %vm235_vm6 = vcmp.le.f32.partialorder %v231_v53, %v234_v32 }
 0x35a   : > { %v236_v33 = vsel %vm235_vm6, %v1490_v31, 64.0 }
 0x35b   : > { %v237_v34 = vsel %vm207_vm0, %v236_v33, inf }
 0x35c   : > { %238 = vmin.xlane.f32.xlu0 %v237_v34 }
 0x3e5   : > { %v239_v35 = vpop.xlane.xlu0 %238 }
 0x3e6   : > { %vm240_vm7 = vcmp.eq.f32.partialorder %v1490_v31, %v239_v35 }
 0x3e7   : > { %v1370_v36 = vsel %vm240_vm7, 1.0, %v1442_v44  ;;  %v243_v37 = vsel %vm240_vm7, 1e+30, %v231_v53 }
 0x3e8   : > { %v412_v38 = vcombine.high %v1370_v36, %v1370_v36  ;;  %v419_v39 = vrot.slane %v1370_v36, %v1499_v46  ;;  %v244_v40 = vsel %vm207_vm0, %v243_v37, inf }
 0x3e9   : > { %245 = vmin.xlane.f32.xlu1 %v244_v40 }
 0x3ea   : > { %v426_v41 = vrot.slane %v412_v38, %v1499_v46  ;;  %v427_v42 = vcombine.high %v419_v39, %v419_v39  ;;  %v435_v43 = vrot.slane %v419_v39, %v1499_v46 }
 0x3ec   : > { %v428_v45 = vcombine.high %v426_v41, %v426_v41  ;;  %v442_v47 = vrot.slane %v426_v41, %v1499_v46  ;;  %v449_v48 = vrot.slane %v427_v42, %v1499_v46  ;;  %v457_v49 = vcombine.high %v435_v43, %v435_v43 }
 0x3ed   : > { %v754_v50 = vrot.slane %v435_v43, %v1485_v8 }
 0x3ee   : > { %v456_v51 = vrot.slane %v428_v45, %v1499_v46  ;;  %v458_v52 = vcombine.high %v442_v47, %v442_v47  ;;  %v459_v53 = vcombine.high %v449_v48, %v449_v48  ;;  %v758_v54 = vrot.slane %v449_v48, %v1485_v8 }
 0x3ef   : > { %v762_v55 = vrot.slane %v457_v49, %v1485_v8  ;;  %v770_v56 = vrot.slane %v442_v47, %v1485_v8  ;;  %v1001_v57 = vsel %vm1000_vm8, %v992_v17, %v754_v50 }
 0x3f0   : > { %v460_v58 = vcombine.high %v456_v51, %v456_v51  ;;  %v766_v59 = vrot.slane %v459_v53, %v1485_v8  ;;  %v774_v60 = vrot.slane %v456_v51, %v1485_v8  ;;  %v778_v61 = vrot.slane %v458_v52, %v1485_v8 }
 0x3f1   : > { %v1002_v62 = vsel %vm1000_vm8, %v993_v23, %v758_v54  ;;  %v1003_v63 = vsel %vm1000_vm8, %v994_v24, %v762_v55  ;;  %v1005_v0 = vsel %vm1000_vm8, %v996_v25, %v770_v56 }
 0x3f2   : > { %v782_v1 = vrot.slane %v460_v58, %v1485_v8  ;;  %v1006_v3 = vsel %vm1000_vm8, %v997_v28, %v774_v60  ;;  %v1007_v4 = vsel %vm1000_vm8, %v998_v29, %v778_v61  ;;  %v1004_v5 = vsel %vm1000_vm8, %v995_v27, %v766_v59 }
 0x3f4   : > { %v1008_v6 = vsel %vm1000_vm8, %v999_v30, %v782_v1  ;;  %vm1045_vm8 = vcmask 1046528  }
 0x472   : > { %v246_v7 = vpop.xlane.xlu1 %245 }
 0x473   : > { %vm247_vm9 = vcmp.le.f32.partialorder %v243_v37, %v246_v7 }
 0x474   : > { %v248_v9 = vsel %vm247_vm9, %v1490_v31, 64.0 }
 0x475   : > { %v249_v10 = vsel %vm207_vm0, %v248_v9, inf }
 0x476   : > { %250 = vmin.xlane.f32.xlu0 %v249_v10 }
 0x4ff   : > { %v251_v11 = vpop.xlane.xlu0 %250 }
 0x500   : > { %vm252_vm10 = vcmp.eq.f32.partialorder %v1490_v31, %v251_v11 }
 0x501   : > { %v1371_v12 = vsel %vm252_vm10, 1.0, %v1442_v44  ;;  %v255_v13 = vsel %vm252_vm10, 1e+30, %v243_v37 }
 0x502   : > { %v462_v14 = vcombine.high %v1371_v12, %v1371_v12  ;;  %v469_v15 = vrot.slane %v1371_v12, %v1499_v46  ;;  %v256_v16 = vsel %vm207_vm0, %v255_v13, inf }
 0x503   : > { %257 = vmin.xlane.f32.xlu1 %v256_v16 }
 0x504   : > { %v476_v17 = vrot.slane %v462_v14, %v1499_v46  ;;  %v477_v18 = vcombine.high %v469_v15, %v469_v15  ;;  %v485_v19 = vrot.slane %v469_v15, %v1499_v46 }
 0x506   : > { %v478_v20 = vcombine.high %v476_v17, %v476_v17  ;;  %v492_v21 = vrot.slane %v476_v17, %v1499_v46  ;;  %v499_v22 = vrot.slane %v477_v18, %v1499_v46  ;;  %v507_v23 = vcombine.high %v485_v19, %v485_v19 }
 0x507   : > { %v794_v24 = vrot.slane %v485_v19, %v1485_v8 }
 0x508   : > { %v506_v25 = vrot.slane %v478_v20, %v1499_v46  ;;  %v508_v26 = vcombine.high %v492_v21, %v492_v21  ;;  %v509_v27 = vcombine.high %v499_v22, %v499_v22  ;;  %v798_v28 = vrot.slane %v499_v22, %v1485_v8 }
 0x509   : > { %v802_v29 = vrot.slane %v507_v23, %v1485_v8  ;;  %v810_v30 = vrot.slane %v492_v21, %v1485_v8  ;;  %v1010_v32 = vsel %vm1009_vm11, %v1001_v57, %v794_v24 }
 0x50a   : > { %v510_v33 = vcombine.high %v506_v25, %v506_v25  ;;  %v806_v34 = vrot.slane %v509_v27, %v1485_v8  ;;  %v814_v35 = vrot.slane %v506_v25, %v1485_v8  ;;  %v818_v36 = vrot.slane %v508_v26, %v1485_v8 }
 0x50b   : > { %v1011_v37 = vsel %vm1009_vm11, %v1002_v62, %v798_v28  ;;  %v1014_v38 = vsel %vm1009_vm11, %v1005_v0, %v810_v30  ;;  %v1012_v39 = vsel %vm1009_vm11, %v1003_v63, %v802_v29 }
 0x50c   : > { %v822_v40 = vrot.slane %v510_v33, %v1485_v8  ;;  %v1015_v41 = vsel %vm1009_vm11, %v1006_v3, %v814_v35  ;;  %v1016_v42 = vsel %vm1009_vm11, %v1007_v4, %v818_v36  ;;  %v1013_v43 = vsel %vm1009_vm11, %v1004_v5, %v806_v34 }
 0x50e   : > { %v1017_v45 = vsel %vm1009_vm11, %v1008_v6, %v822_v40 }
 0x58c   : > { %v258_v47 = vpop.xlane.xlu1 %257 }
 0x58d   : > { %vm259_vm12 = vcmp.le.f32.partialorder %v255_v13, %v258_v47 }
 0x58e   : > { %v260_v48 = vsel %vm259_vm12, %v1490_v31, 64.0 }
 0x58f   : > { %v261_v49 = vsel %vm207_vm0, %v260_v48, inf }
 0x590   : > { %262 = vmin.xlane.f32.xlu0 %v261_v49 }
 0x619   : > { %v263_v50 = vpop.xlane.xlu0 %262 }
 0x61a   : > { %vm264_vm13 = vcmp.eq.f32.partialorder %v1490_v31, %v263_v50 }
 0x61b   : > { %v1372_v51 = vsel %vm264_vm13, 1.0, %v1442_v44  ;;  %v267_v52 = vsel %vm264_vm13, 1e+30, %v255_v13 }
 0x61c   : > { %v512_v53 = vcombine.high %v1372_v51, %v1372_v51  ;;  %v519_v54 = vrot.slane %v1372_v51, %v1499_v46  ;;  %v268_v55 = vsel %vm207_vm0, %v267_v52, inf }
 0x61d   : > { %269 = vmin.xlane.f32.xlu1 %v268_v55 }
 0x61e   : > { %v526_v56 = vrot.slane %v512_v53, %v1499_v46  ;;  %v527_v57 = vcombine.high %v519_v54, %v519_v54  ;;  %v535_v58 = vrot.slane %v519_v54, %v1499_v46 }
 0x620   : > { %v528_v59 = vcombine.high %v526_v56, %v526_v56  ;;  %v542_v60 = vrot.slane %v526_v56, %v1499_v46  ;;  %v549_v61 = vrot.slane %v527_v57, %v1499_v46  ;;  %v557_v62 = vcombine.high %v535_v58, %v535_v58 }
 0x621   : > { %v834_v63 = vrot.slane %v535_v58, %v1485_v8 }
 0x622   : > { %v556_v0 = vrot.slane %v528_v59, %v1499_v46  ;;  %v558_v1 = vcombine.high %v542_v60, %v542_v60  ;;  %v559_v3 = vcombine.high %v549_v61, %v549_v61  ;;  %v838_v4 = vrot.slane %v549_v61, %v1485_v8 }
 0x623   : > { %v842_v5 = vrot.slane %v557_v62, %v1485_v8  ;;  %v850_v6 = vrot.slane %v542_v60, %v1485_v8  ;;  %v1019_v7 = vsel %vm1018_vm14, %v1010_v32, %v834_v63 }
 0x624   : > { %v560_v9 = vcombine.high %v556_v0, %v556_v0  ;;  %v846_v10 = vrot.slane %v559_v3, %v1485_v8  ;;  %v854_v11 = vrot.slane %v556_v0, %v1485_v8  ;;  %v858_v12 = vrot.slane %v558_v1, %v1485_v8 }
 0x625   : > { %v1020_v13 = vsel %vm1018_vm14, %v1011_v37, %v838_v4  ;;  %v1023_v14 = vsel %vm1018_vm14, %v1014_v38, %v850_v6  ;;  %v1021_v15 = vsel %vm1018_vm14, %v1012_v39, %v842_v5 }
 0x626   : > { %v862_v16 = vrot.slane %v560_v9, %v1485_v8  ;;  %v1024_v17 = vsel %vm1018_vm14, %v1015_v41, %v854_v11  ;;  %v1025_v18 = vsel %vm1018_vm14, %v1016_v42, %v858_v12  ;;  %v1022_v19 = vsel %vm1018_vm14, %v1013_v43, %v846_v10 }
 0x628   : > { %v1026_v20 = vsel %vm1018_vm14, %v1017_v45, %v862_v16 }
 0x6a6   : > { %v270_v21 = vpop.xlane.xlu1 %269 }
 0x6a7   : > { %vm271_vm15 = vcmp.le.f32.partialorder %v267_v52, %v270_v21 }
 0x6a8   : > { %v272_v22 = vsel %vm271_vm15, %v1490_v31, 64.0 }
 0x6a9   : > { %v273_v23 = vsel %vm207_vm0, %v272_v22, inf }
 0x6aa   : > { %274 = vmin.xlane.f32.xlu0 %v273_v23 }
 0x733   : > { %v275_v24 = vpop.xlane.xlu0 %274 }
 0x734   : > { %vm276_vm1 = vcmp.eq.f32.partialorder %v1490_v31, %v275_v24 }
 0x735   : > { %v1373_v25 = vsel %vm276_vm1, 1.0, %v1442_v44  ;;  %v279_v26 = vsel %vm276_vm1, 1e+30, %v267_v52 }
 0x736   : > { %v562_v27 = vcombine.high %v1373_v25, %v1373_v25  ;;  %v569_v28 = vrot.slane %v1373_v25, %v1499_v46  ;;  %v280_v29 = vsel %vm207_vm0, %v279_v26, inf }
 0x737   : > { %281 = vmin.xlane.f32.xlu1 %v280_v29 }
 0x738   : > { %v576_v30 = vrot.slane %v562_v27, %v1499_v46  ;;  %v577_v32 = vcombine.high %v569_v28, %v569_v28  ;;  %v585_v33 = vrot.slane %v569_v28, %v1499_v46 }
 0x73a   : > { %v578_v34 = vcombine.high %v576_v30, %v576_v30  ;;  %v592_v35 = vrot.slane %v576_v30, %v1499_v46  ;;  %v599_v36 = vrot.slane %v577_v32, %v1499_v46  ;;  %v607_v37 = vcombine.high %v585_v33, %v585_v33 }
 0x73b   : > { %v874_v38 = vrot.slane %v585_v33, %v1485_v8 }
 0x73c   : > { %v606_v39 = vrot.slane %v578_v34, %v1499_v46  ;;  %v608_v40 = vcombine.high %v592_v35, %v592_v35  ;;  %v609_v41 = vcombine.high %v599_v36, %v599_v36  ;;  %v878_v42 = vrot.slane %v599_v36, %v1485_v8 }
 0x73d   : > { %v882_v43 = vrot.slane %v607_v37, %v1485_v8  ;;  %v890_v45 = vrot.slane %v592_v35, %v1485_v8  ;;  %v1028_v47 = vsel %vm1027_vm2, %v1019_v7, %v874_v38 }
 0x73e   : > { %v610_v48 = vcombine.high %v606_v39, %v606_v39  ;;  %v886_v49 = vrot.slane %v609_v41, %v1485_v8  ;;  %v894_v50 = vrot.slane %v606_v39, %v1485_v8  ;;  %v898_v51 = vrot.slane %v608_v40, %v1485_v8 }
 0x73f   : > { %v1029_v52 = vsel %vm1027_vm2, %v1020_v13, %v878_v42  ;;  %v1032_v53 = vsel %vm1027_vm2, %v1023_v14, %v890_v45  ;;  %v1030_v54 = vsel %vm1027_vm2, %v1021_v15, %v882_v43 }
 0x740   : > { %v1033_v55 = vsel %vm1027_vm2, %v1024_v17, %v894_v50  ;;  %v1034_v56 = vsel %vm1027_vm2, %v1025_v18, %v898_v51  ;;  %v1031_v57 = vsel %vm1027_vm2, %v1022_v19, %v886_v49  ;;  %v902_v58 = vrot.slane %v610_v48, %v1485_v8 }
 0x742   : > { %v1035_v59 = vsel %vm1027_vm2, %v1026_v20, %v902_v58 }
 0x7c0   : > { %v282_v60 = vpop.xlane.xlu1 %281 }
 0x7c1   : > { %vm283_vm3 = vcmp.le.f32.partialorder %v279_v26, %v282_v60 }
 0x7c2   : > { %v284_v61 = vsel %vm283_vm3, %v1490_v31, 64.0 }
 0x7c3   : > { %v285_v62 = vsel %vm207_vm0, %v284_v61, inf }
 0x7c4   : > { %286 = vmin.xlane.f32.xlu0 %v285_v62 }
 0x84d   : > { %v287_v63 = vpop.xlane.xlu0 %286 }
 0x84e   : > { %vm288_vm4 = vcmp.eq.f32.partialorder %v1490_v31, %v287_v63 }
 0x84f   : > { %v1374_v0 = vsel %vm288_vm4, 1.0, %v1442_v44  ;;  %v291_v1 = vsel %vm288_vm4, 1e+30, %v279_v26 }
 0x850   : > { %v612_v3 = vcombine.high %v1374_v0, %v1374_v0  ;;  %v619_v4 = vrot.slane %v1374_v0, %v1499_v46  ;;  %v292_v5 = vsel %vm207_vm0, %v291_v1, inf }
 0x851   : > { %293 = vmin.xlane.f32.xlu1 %v292_v5 }
 0x852   : > { %v626_v6 = vrot.slane %v612_v3, %v1499_v46  ;;  %v627_v7 = vcombine.high %v619_v4, %v619_v4  ;;  %v635_v9 = vrot.slane %v619_v4, %v1499_v46 }
 0x854   : > { %v628_v10 = vcombine.high %v626_v6, %v626_v6  ;;  %v642_v11 = vrot.slane %v626_v6, %v1499_v46  ;;  %v649_v12 = vrot.slane %v627_v7, %v1499_v46  ;;  %v657_v13 = vcombine.high %v635_v9, %v635_v9 }
 0x855   : > { %v914_v14 = vrot.slane %v635_v9, %v1485_v8  ;;  %v1186_v6 = vcombine.high %v1472_v2, %v1472_v2  ;;  %v1193_v7 = vrot.slane %v1472_v2, %v1499_v46 }
 0x856   : > { %v656_v15 = vrot.slane %v628_v10, %v1499_v46  ;;  %v658_v16 = vcombine.high %v642_v11, %v642_v11  ;;  %v659_v17 = vcombine.high %v649_v12, %v649_v12  ;;  %v918_v18 = vrot.slane %v649_v12, %v1485_v8 }
 0x857   : > { %v922_v19 = vrot.slane %v657_v13, %v1485_v8  ;;  %v1037_v20 = vsel %vm1036_vm5, %v1028_v47, %v914_v14  ;;  %v930_v21 = vrot.slane %v642_v11, %v1485_v8  ;;  %v1200_v9 = vrot.slane %v1186_v6, %v1499_v46 }
 0x858   : > { %v660_v22 = vcombine.high %v656_v15, %v656_v15  ;;  %v1038_v23 = vsel %vm1036_vm5, %v1029_v52, %v918_v18  ;;  %v934_v24 = vrot.slane %v656_v15, %v1485_v8  ;;  %v938_v25 = vrot.slane %v658_v16, %v1485_v8 }
 0x859   : > { %v1041_v26 = vsel %vm1036_vm5, %v1032_v53, %v930_v21  ;;  %v1039_v27 = vsel %vm1036_vm5, %v1030_v54, %v922_v19  ;;  %v926_v28 = vrot.slane %v659_v17, %v1485_v8  ;;  %v1201_v10 = vcombine.high %v1193_v7, %v1193_v7 }
 0x85a   : > { %v1042_v29 = vsel %vm1036_vm5, %v1033_v55, %v934_v24  ;;  %v1043_v30 = vsel %vm1036_vm5, %v1034_v56, %v938_v25  ;;  %v942_v32 = vrot.slane %v660_v22, %v1485_v8  ;;  %v1202_v11 = vcombine.high %v1200_v9, %v1200_v9 }
 0x85b   : > { %v1040_v33 = vsel %vm1036_vm5, %v1031_v57, %v926_v28  ;;  %v1223_v12 = vrot.slane %v1201_v10, %v1499_v46  ;;  %v1209_v13 = vrot.slane %v1193_v7, %v1499_v46  ;;  %v1216_v17 = vrot.slane %v1200_v9, %v1499_v46 }
 0x85c   : > { %v1044_v34 = vsel %vm1036_vm5, %v1035_v59, %v942_v32  ;;  %v1230_v14 = vrot.slane %v1202_v11, %v1499_v46 }
 0x85d   : > { %v1242_v15 = vrot.slane %v1223_v12, %v1485_v8  ;;  %v1233_v16 = vcombine.high %v1223_v12, %v1223_v12  ;;  %v1238_v18 = vrot.slane %v1209_v13, %v1485_v8  ;;  %v1231_v19 = vcombine.high %v1209_v13, %v1209_v13 }
 0x85e   : > { %v1258_v2 = vrot.slane %v1230_v14, %v1485_v8  ;;  %v1232_v24 = vcombine.high %v1216_v17, %v1216_v17 }
 0x8da   : > { %v294_v35 = vpop.xlane.xlu1 %293 }
 0x8db   : > { %vm295_vm6 = vcmp.le.f32.partialorder %v291_v1, %v294_v35 }
 0x8dc   : > { %v296_v36 = vsel %vm295_vm6, %v1490_v31, 64.0 }
 0x8dd   : > { %v297_v37 = vsel %vm207_vm0, %v296_v36, inf  ;;  %v1262_v36 = vrot.slane %v1232_v24, %v1485_v8 }
 0x8de   : > { %298 = vmin.xlane.f32.xlu0 %v297_v37 }
 0x967   : > { %v299_v38 = vpop.xlane.xlu0 %298 }
 0x968   : > { %vm300_vm7 = vcmp.eq.f32.partialorder %v1490_v31, %v299_v38 }
 0x969   : > { %v1375_v39 = vsel %vm300_vm7, 1.0, %v1442_v44 }
 0x96a   : > { %v662_v40 = vcombine.high %v1375_v39, %v1375_v39  ;;  %v669_v41 = vrot.slane %v1375_v39, %v1499_v46 }
 0x96c   : > { %v676_v42 = vrot.slane %v662_v40, %v1499_v46  ;;  %v677_v43 = vcombine.high %v669_v41, %v669_v41  ;;  %v685_v45 = vrot.slane %v669_v41, %v1499_v46 }
 0x96e   : > { %v678_v47 = vcombine.high %v676_v42, %v676_v42  ;;  %v692_v48 = vrot.slane %v676_v42, %v1499_v46  ;;  %v699_v49 = vrot.slane %v677_v43, %v1499_v46  ;;  %v707_v50 = vcombine.high %v685_v45, %v685_v45 }
 0x96f   : > { %v954_v51 = vrot.slane %v685_v45, %v1485_v8 }
 0x970   : > { %v706_v31 = vrot.slane %v678_v47, %v1499_v46  ;;  %v708_v44 = vcombine.high %v692_v48, %v692_v48  ;;  %v709_v52 = vcombine.high %v699_v49, %v699_v49  ;;  %v958_v53 = vrot.slane %v699_v49, %v1485_v8 }
 0x971   : > { %v1046_v54 = vsel %vm1045_vm8, %v1037_v20, %v954_v51  ;;  %v970_v55 = vrot.slane %v692_v48, %v1485_v8  ;;  %v962_v56 = vrot.slane %v707_v50, %v1485_v8  ;;  %v1234_v20 = vcombine.high %v1230_v14, %v1230_v14 }
 0x972   : > { %1399 = vmatprep.mubr.msk.f32.mxu0 %vm207_vm0, %v1046_v54  ;;  %v1047_v57 = vsel %vm1045_vm8, %v1038_v23, %v958_v53  ;;  %v974_v58 = vrot.slane %v706_v31, %v1485_v8  ;;  %v978_v59 = vrot.slane %v708_v44, %v1485_v8  ;;  %v966_v60 = vrot.slane %v709_v52, %v1485_v8 }
 0x973   : > { %1400 = vmatmul.mubr.msk.f32.vlgmr.msra.gmra.mxu0 %vm207_vm0, %v1047_v57  ;;  %v1050_v61 = vsel %vm1045_vm8, %v1041_v26, %v970_v55  ;;  %v1048_v62 = vsel %vm1045_vm8, %v1039_v27, %v962_v56  ;;  %v710_v63 = vcombine.high %v706_v31, %v706_v31  ;;  %v1250_v23 = vrot.slane %v1233_v16, %v1485_v8 }
 0x974   : > { %1405 = vmatprep.mubr.msk.f32.mxu1 %vm207_vm0, %v1050_v61  ;;  %1402 = vmatprep.mubr.msk.f32.mxu0 %vm207_vm0, %v1048_v62  ;;  %v1051_v0 = vsel %vm1045_vm8, %v1042_v29, %v974_v58  ;;  %v1052_v1 = vsel %vm1045_vm8, %v1043_v30, %v978_v59  ;;  %v1049_v4 = vsel %vm1045_vm8, %v1040_v33, %v966_v60 }
 0x975   : > { %1406 = vmatmul.mubr.msk.f32.vlgmr.msra.gmra.mxu1 %vm207_vm0, %v1051_v0  ;;  %v982_v3 = vrot.slane %v710_v63, %v1485_v8  ;;  %v1254_v46 = vrot.slane %v1216_v17, %v1485_v8  ;;  %v1246_v29 = vrot.slane %v1231_v19, %v1485_v8  ;;  %v1266_v30 = vrot.slane %v1234_v20, %v1485_v8 }
 0x976   : > { %1408 = vmatprep.mubr.msk.f32.mxu1 %vm207_vm0, %v1052_v1 }
 0x977   : > { %1403 = vmatmul.mubr.msk.f32.gmra.mxu0 %vm207_vm0, %v1049_v4  ;;  %v1053_v5 = vsel %vm1045_vm8, %v1044_v34, %v982_v3 }
 0x979   : > { %1409 = vmatmul.mubr.msk.f32.gmra.mxu1 %vm207_vm0, %v1053_v5  ;;  %vm1283_vm0 = vcmask 23552  }
 0xa33   : > { %v1401_v21 = vpop.f32.mrf.mxu0 }
 0xa34   : > { %v1276_v22 = vsub.f32 %v1401_v21, %v1242_v15 }
 0xa35   : > { %v1147_v25 = vpop.f32.mrf.mxu0  ;;  %v1407_v26 = vpop.f32.mrf.mxu1 }
 0xa36   : > { %1285 = vst.msk [vmem:[%s1717_s22 + $0x8] sm:$0xff] %vm1283_vm0, %v1276_v22  ;;  %v1275_v27 = vsub.f32 %v1147_v25, %v1238_v18  ;;  %v1280_v28 = vsub.f32 %v1407_v26, %v1258_v2 }
 0xa37   : > { %v1404_v32 = vpop.f32.mrf.mxu0  ;;  %v1167_v33 = vpop.f32.mrf.mxu1 }
 0xa38   : > { %1284 = vst.msk [vmem:[%s1717_s22] sm:$0xff] %vm1283_vm0, %v1275_v27  ;;  %1289 = vst.msk [vmem:[%s1717_s22 + $0x28] sm:$0xff] %vm1283_vm0, %v1280_v28  ;;  %v1278_v34 = vsub.f32 %v1404_v32, %v1250_v23  ;;  %v1279_v35 = vsub.f32 %v1167_v33, %v1254_v46 }
 0xa39   : > { %v1157_v37 = vpop.f32.mrf.mxu0  ;;  %v1410_v38 = vpop.f32.mrf.mxu1 }
 0xa3a   : > { %1287 = vst.msk [vmem:[%s1717_s22 + $0x18] sm:$0xff] %vm1283_vm0, %v1278_v34  ;;  %1288 = vst.msk [vmem:[%s1717_s22 + $0x20] sm:$0xff] %vm1283_vm0, %v1279_v35  ;;  %v1277_v39 = vsub.f32 %v1157_v37, %v1246_v29  ;;  %v1282_v40 = vsub.f32 %v1410_v38, %v1266_v30 }
 0xa3b   : > { %v1177_v41 = vpop.f32.mrf.mxu1 }
 0xa3c   : > { %1286 = vst.msk [vmem:[%s1717_s22 + $0x10] sm:$0xff] %vm1283_vm0, %v1277_v39  ;;  %1291 = vst.msk [vmem:[%s1717_s22 + $0x38] sm:$0xff] %vm1283_vm0, %v1282_v40  ;;  %v1281_v42 = vsub.f32 %v1177_v41, %v1262_v36 }
 0xa3e   : > { %1290 = vst.msk [vmem:[%s1717_s22 + $0x30] sm:$0xff] %vm1283_vm0, %v1281_v42 }
 0xa3f PF: > { %s12_s9 = sadd.s32 1, %s1436_s9  }
 0xa40   : > { %p9_p4 = scmp.ge.s32.totalorder %s12_s9, 4  }
 0xa42   :  { %11 = sbr.rel (!%p9_p4) target bundleno = 1 (0x1), region = 61 }

</bundles_post_ra>
